<compile_context>
chip_gen: v7x
topology: tpu7x:2x2x1
jax: 0.10.0
libtpu: 0.0.40
codegen_flags: <defaults>
</compile_context>

<pallas_src>
import jax
import jax.numpy as jnp
from jax.experimental import pallas as pl
from jax.experimental.pallas import tpu as pltpu


def _cdiv(a, b):
    return (a + b - 1) // b


def _round_up(x, m):
    return ((x + m - 1) // m) * m


def _bf16_compute_ok():
    """bf16 VPU/EUP is available on v6e/v7x but not v5e (or older)."""
    try:
        d = jax.devices()[0]
        if d.platform != "tpu":
            return False
        kind = d.device_kind.lower()
        for bad in ("v2", "v3", "v4", "v5"):
            if bad in kind:
                return False
        return True
    except Exception:
        return False


def _make_prob_kernel(compute_dtype):
    def _prob_kernel(logits_ref, pmT_ref, prob_ref):
        # sigmoid in compute_dtype (bf16 on v6e/v7x when logits are bf16,
        # f32 otherwise); MXU matmul always accumulates in f32.
        sig = jax.nn.sigmoid(logits_ref[...].astype(compute_dtype))     # (tm, T)
        prob_ref[...] = jnp.dot(sig, pmT_ref[...],
                                preferred_element_type=jnp.float32)     # (tm, C)
    return _prob_kernel


def postprocess_pallas(out_logits, out_bbox, positive_map, target_sizes,
                       num_select, target_block_bytes=2 * 1024 * 1024):
    """scores, labels, boxes — matching PostProcess.forward (not_to_xyxy=False)."""
    B, Q, T = out_logits.shape
    C = positive_map.shape[0]

    # ---- normalize each positive-map row to sum 1 (zero rows untouched) — glue ----
    row_sum = positive_map.sum(axis=1, keepdims=True)
    safe_sum = jnp.where(row_sum == 0, 1.0, row_sum)
    pos_map_norm = jnp.where(row_sum != 0, positive_map / safe_sum, positive_map)

    # ---- compute dtype: bf16 sigmoid/MXU path only for bf16 logits on >=v6e ----
    use_bf16 = (out_logits.dtype == jnp.bfloat16) and _bf16_compute_ok()
    compute_dtype = jnp.bfloat16 if use_bf16 else jnp.float32
    pmT = pos_map_norm.T.astype(compute_dtype)                           # (T, C)

    # ---- fold batch into M; pick row-tile size from M (no padding of logits) ----
    M = B * Q
    logits2d = out_logits.reshape(M, T)                                  # native dtype, no copy

    in_bytes = jnp.dtype(out_logits.dtype).itemsize
    rows_target = max(8, target_block_bytes // (T * in_bytes))           # ~2 MiB blocks
    n_tiles = max(2, _cdiv(M, rows_target))                              # >=2 tiles -> both v7x TCs
    tm = max(8, _round_up(_cdiv(M, n_tiles), 8))                         # sublane-aligned
    grid_m = _cdiv(M, tm)                                                # ragged last tile OK

    prob2d = pl.pallas_call(
        _make_prob_kernel(compute_dtype),
        grid=(grid_m,),
        in_specs=[
            pl.BlockSpec((tm, T), lambda i: (i, 0)),                     # logits row-tile
            pl.BlockSpec((T, C), lambda i: (0, 0)),                      # pos_map^T (resident)
        ],
        out_specs=pl.BlockSpec((tm, C), lambda i: (i, 0)),
        out_shape=jax.ShapeDtypeStruct((M, C), jnp.float32),
        compiler_params=pltpu.CompilerParams(
            dimension_semantics=("parallel",)),
    )(logits2d, pmT)

    prob = prob2d.reshape(B, Q, C)

    # ---- top-k over flattened (Q*C), index arithmetic, gather (glue) ----
    scores, topk_idx = jax.lax.top_k(prob.reshape(B, Q * C), num_select)
    topk_boxes = topk_idx // C
    labels = topk_idx % C

    # ---- gather selected boxes, then cxcywh->xyxy and per-image scaling ----
    gather_idx = jnp.broadcast_to(topk_boxes[:, :, None], (B, num_select, 4))
    bb = jnp.take_along_axis(out_bbox.astype(jnp.float32), gather_idx, axis=1)
    cxcy, wh = bb[..., :2], bb[..., 2:]
    xyxy = jnp.concatenate([cxcy - 0.5 * wh, cxcy + 0.5 * wh], axis=-1)
    img_h = target_sizes[:, 0].astype(jnp.float32)
    img_w = target_sizes[:, 1].astype(jnp.float32)
    scale = jnp.stack([img_w, img_h, img_w, img_h], axis=1)              # (B, 4)
    boxes = xyxy * scale[:, None, :]
    return scores, labels, boxes


def _reference(out_logits, out_bbox, positive_map, target_sizes, num_select):
    """Pure-JAX reference mirroring the PyTorch forward."""
    B, Q, T = out_logits.shape
    C = positive_map.shape[0]
    row_sum = positive_map.sum(axis=1, keepdims=True)
    pm = jnp.where(row_sum != 0,
                   positive_map / jnp.where(row_sum == 0, 1.0, row_sum),
                   positive_map)
    prob = jax.nn.sigmoid(out_logits.astype(jnp.float32)) @ pm.T         # (B, Q, C)
    scores, idx = jax.lax.top_k(prob.reshape(B, -1), num_select)
    topk_boxes = idx // C
    labels = idx % C
    cxcy, wh = out_bbox[..., :2], out_bbox[..., 2:]
    xyxy = jnp.concatenate([cxcy - 0.5 * wh, cxcy + 0.5 * wh], axis=-1)
    boxes = jnp.take_along_axis(
        xyxy, jnp.broadcast_to(topk_boxes[:, :, None], (B, num_select, 4)), axis=1)
    img_h, img_w = target_sizes[:, 0], target_sizes[:, 1]
    scale = jnp.stack([img_w, img_h, img_w, img_h], axis=1)              # (B, 4)
    boxes = boxes * scale[:, None, :]
    return scores, labels, boxes


if __name__ == "__main__":
    key = jax.random.PRNGKey(0)
    B, Q, T, C = 2, 16, 256, 4
    num_select = 8

    k1, k2 = jax.random.split(key)
    out_logits = jax.random.normal(k1, (B, Q, T), dtype=jnp.float32)
    # boxes as cxcywh in (0, 1)
    out_bbox = jax.random.uniform(k2, (B, Q, 4), dtype=jnp.float32,
                                  minval=0.1, maxval=0.4)

    # Deterministic synthetic positive map (replaces tokenizer-driven create_positive_map):
    # class j is associated with tokens [2 + 3*j, 2 + 3*j + 2].
    # TODO(synk): real tokenizer / caption char_to_token mapping has no Pallas equivalent.
    pos_map = jnp.zeros((C, T), dtype=jnp.float32)
    for j in range(C):
        pos_map = pos_map.at[j, 2 + 3 * j: 2 + 3 * j + 3].set(1.0)

    target_sizes = jnp.array([[480.0, 640.0], [320.0, 400.0]], dtype=jnp.float32)

    # f32 path — exact check against pure-JAX reference.
    scores, labels, boxes = postprocess_pallas(
        out_logits, out_bbox, pos_map, target_sizes, num_select)
    jax.block_until_ready((scores, labels, boxes))

    r_scores, r_labels, r_boxes = _reference(
        out_logits, out_bbox, pos_map, target_sizes, num_select)
    assert jnp.allclose(scores, r_scores, atol=1e-5), "scores mismatch"
    assert jnp.array_equal(labels, r_labels), "labels mismatch"
    assert jnp.allclose(boxes, r_boxes, atol=1e-3), "boxes mismatch"

    # bf16-input smoke run (bf16 sigmoid/MXU path on v6e/v7x, f32 upcast on v5e).
    s_bf, l_bf, b_bf = postprocess_pallas(
        out_logits.astype(jnp.bfloat16), out_bbox, pos_map, target_sizes, num_select)
    jax.block_until_ready((s_bf, l_bf, b_bf))
    assert s_bf.shape == (B, num_select) and bool(jnp.all(jnp.isfinite(s_bf)))
    assert b_bf.shape == (B, num_select, 4) and bool(jnp.all(jnp.isfinite(b_bf)))

    print("KERNEL_OK")
</pallas_src>

<mosaic_0001>
module attributes {stable_mosaic.version = 11 : i64} {
  func.func @_prob_kernel(%arg0: i32, %arg1: memref<16x256xf32, #tpu.memory_space<vmem>>, %arg2: memref<256x4xf32, #tpu.memory_space<vmem>>, %arg3: memref<16x4xf32, #tpu.memory_space<vmem>>) attributes {dimension_semantics = [#tpu.dimension_semantics<parallel>], iteration_bounds = array<i64: 2>, scalar_prefetch = 0 : i64, scratch_operands = 0 : i64, tpu.core_type = #tpu.core_type<tc>, window_params = [{transform_indices = @transform_0, window_bounds = array<i64: 16, 256>}, {pipeline_mode = #tpu.pipeline_mode<synchronous>, transform_indices = @transform_1, window_bounds = array<i64: 256, 4>}, {transform_indices = @transform_2, window_bounds = array<i64: 16, 4>}]} {
    %c0 = arith.constant 0 : index
    %c0_0 = arith.constant 0 : index
    %0 = vector.load %arg1[%c0, %c0_0] : memref<16x256xf32, #tpu.memory_space<vmem>>, vector<16x256xf32>
    %1 = arith.negf %0 : vector<16x256xf32>
    %2 = math.exp %1 : vector<16x256xf32>
    %cst = arith.constant 1.000000e+00 : f32
    %3 = vector.broadcast %cst : f32 to vector<16x256xf32>
    %4 = arith.addf %3, %2 : vector<16x256xf32>
    %5 = arith.divf %3, %4 : vector<16x256xf32>
    %c0_1 = arith.constant 0 : index
    %c0_2 = arith.constant 0 : index
    %6 = vector.load %arg2[%c0_1, %c0_2] : memref<256x4xf32, #tpu.memory_space<vmem>>, vector<256x4xf32>
    %cst_3 = arith.constant dense<0.000000e+00> : vector<16x4xf32>
    %7 = tpu.matmul %5, %6, %cst_3 {dimension_numbers = #tpu.dot_dimension_numbers<[1], [0], [0], [1], [0, 0, 1, 1], [], []>} : vector<16x256xf32>, vector<256x4xf32>, vector<16x4xf32> -> vector<16x4xf32>
    %c0_4 = arith.constant 0 : index
    %c0_5 = arith.constant 0 : index
    %8 = vector.load %arg3[%c0_4, %c0_5] : memref<16x4xf32, #tpu.memory_space<vmem>>, vector<16x4xf32>
    tpu.vector_store %arg3[%c0_4, %c0_5], %7 {strides = array<i32>} : memref<16x4xf32, #tpu.memory_space<vmem>>, vector<16x4xf32>,
    return
  }
  func.func @transform_0(%arg0: i32) -> (i32, i32) {
    %c0_i32 = arith.constant 0 : i32
    %c0_i32_0 = arith.constant 0 : i32
    return %arg0, %c0_i32 : i32, i32
  }
  func.func @transform_1(%arg0: i32) -> (i32, i32) {
    %c0_i32 = arith.constant 0 : i32
    %c0_i32_0 = arith.constant 0 : i32
    %c0_i32_1 = arith.constant 0 : i32
    return %c0_i32, %c0_i32_0 : i32, i32
  }
  func.func @transform_2(%arg0: i32) -> (i32, i32) {
    %c0_i32 = arith.constant 0 : i32
    %c0_i32_0 = arith.constant 0 : i32
    return %arg0, %c0_i32 : i32, i32
  }
}

</mosaic_0001>

<bundles_post_ra>
// kernel: tpu_custom_call.1
= control target key start
LH: loop header
LB: loop body
LE: loop exit
PB: predicated region body
PF: predicated region fallthrough
CT: control target
= control target key end

     0   :  { %s494_s9 = smov 0   ;;  %s611_s0 = inlined_call_operand.vmem [shape: f32[32,256], index: 0, kind: input, shape index: {}]   ;;  %s612_s1 = inlined_call_operand.vmem [shape: f32[256,4], index: 1, kind: input, shape index: {}]   ;;  %s613_s2 = inlined_call_operand.vmem [shape: f32[32,4], index: 2, kind: output, shape index: {}]  }
   0x1 LB: > { %s344_s10 = sadd.s32 4294967295, %s477_s9   ;;  %p348_p0 = scmp.ge.s32.totalorder %s477_s9, 1  ;;  %s477_s9 = sphi %s494_s9, %s12_s9  }
   0x2   : > { %p114_p1 = scmp.lt.s32.totalorder %s477_s9, 3 }
   0x4   : > { %p115_p2 = pnand %p348_p0, %p114_p1 }
   0x5   : > { %v194_v0 = vld [vmem:[%s612_s1 + $0x80] sm:$0xff] (!%p115_p2)  ;;  %v195_v1 = vld [vmem:[%s612_s1 + $0x88] sm:$0xff] (!%p115_p2)  ;;  %s349_s17 = sshll.u32 (!%p115_p2), %s344_s10, 1  ;;  %v196_v5 = vld [vmem:[%s612_s1 + $0x90] sm:$0xff] (!%p115_p2)  ;;  %vm285_vm0 = vcmask (!%p115_p2), 31744  }
   0x6   : > { %118 = sbr.rel (%p115_p2) target bundleno = 263 (0x107), region = 28  ;;  %v178_v2 = vld [vmem:[%s612_s1] sm:$0xff] (!%p115_p2)  ;;  %v399_v3 = vpack.c.bf16 (!%p115_p2), %v195_v1, %v194_v0  ;;  %v179_v4 = vld [vmem:[%s612_s1 + $0x8] sm:$0xff] (!%p115_p2)  ;;  %v197_v6 = vld [vmem:[%s612_s1 + $0x98] sm:$0xff] (!%p115_p2)  ;;  %p138_p3 = scmp.lt.s32.totalorder (!%p115_p2), %s349_s17, 3 }
   0x7   : > { %v401_v7 = vpack.c.bf16 (!%p115_p2), %v179_v4, %v178_v2  ;;  %v403_v8 = vpack.c.bf16 (!%p115_p2), %v197_v6, %v196_v5  ;;  %v180_v9 = vld [vmem:[%s612_s1 + $0x10] sm:$0xff] (!%p115_p2)  ;;  %v181_v10 = vld [vmem:[%s612_s1 + $0x18] sm:$0xff] (!%p115_p2)  ;;  %v198_v11 = vld [vmem:[%s612_s1 + $0xa0] sm:$0xff] (!%p115_p2) }
   0x8   : > { %400 = vmatprep.subr.bf16.mxu0 (!%p115_p2), %v399_v3  ;;  %431 = vmatprep.subr.bf16.mxu1 (!%p115_p2), %v399_v3  ;;  %v199_v12 = vld [vmem:[%s612_s1 + $0xa8] sm:$0xff] (!%p115_p2)  ;;  %v405_v13 = vpack.c.bf16 (!%p115_p2), %v181_v10, %v180_v9  ;;  %v182_v15 = vld [vmem:[%s612_s1 + $0x20] sm:$0xff] (!%p115_p2)  ;;  %v200_v17 = vld [vmem:[%s612_s1 + $0xb0] sm:$0xff] (!%p115_p2) }
   0x9   : > { %402 = vmatpush3.bf16.msra.mxu0 (!%p115_p2), %v401_v7  ;;  %439 = vmatpush3.bf16.msra.mxu1 (!%p115_p2), %v401_v7  ;;  %v407_v14 = vpack.c.bf16 (!%p115_p2), %v199_v12, %v198_v11  ;;  %v183_v16 = vld [vmem:[%s612_s1 + $0x28] sm:$0xff] (!%p115_p2)  ;;  %v201_v18 = vld [vmem:[%s612_s1 + $0xb8] sm:$0xff] (!%p115_p2)  ;;  %v184_v21 = vld [vmem:[%s612_s1 + $0x30] sm:$0xff] (!%p115_p2) }
   0xa   : > { %404 = vmatprep.subr.bf16.mxu0 (!%p115_p2), %v403_v8  ;;  %432 = vmatprep.subr.bf16.mxu1 (!%p115_p2), %v403_v8  ;;  %v409_v19 = vpack.c.bf16 (!%p115_p2), %v183_v16, %v182_v15  ;;  %v411_v20 = vpack.c.bf16 (!%p115_p2), %v201_v18, %v200_v17  ;;  %v185_v22 = vld [vmem:[%s612_s1 + $0x38] sm:$0xff] (!%p115_p2)  ;;  %v202_v23 = vld [vmem:[%s612_s1 + $0xc0] sm:$0xff] (!%p115_p2)  ;;  %v203_v24 = vld [vmem:[%s612_s1 + $0xc8] sm:$0xff] (!%p115_p2) }
   0xb   : > { %v413_v30 = vpack.c.bf16 (!%p115_p2), %v185_v22, %v184_v21  ;;  %v415_v34 = vpack.c.bf16 (!%p115_p2), %v203_v24, %v202_v23  ;;  %v186_v35 = vld [vmem:[%s612_s1 + $0x40] sm:$0xff] (!%p115_p2)  ;;  %v187_v36 = vld [vmem:[%s612_s1 + $0x48] sm:$0xff] (!%p115_p2)  ;;  %v204_v37 = vld [vmem:[%s612_s1 + $0xd0] sm:$0xff] (!%p115_p2) }
   0xc   : > { %v205_v38 = vld [vmem:[%s612_s1 + $0xd8] sm:$0xff] (!%p115_p2)  ;;  %v417_v39 = vpack.c.bf16 (!%p115_p2), %v187_v36, %v186_v35  ;;  %v188_v41 = vld [vmem:[%s612_s1 + $0x50] sm:$0xff] (!%p115_p2)  ;;  %v206_v43 = vld [vmem:[%s612_s1 + $0xe0] sm:$0xff] (!%p115_p2) }
   0xd   : > { %s615_s17 = smov (!%p138_p3, %s349_s17), 3  ;;  %406 = vmatpush3.bf16.msra.mxu0 %v405_v13  ;;  %440 = vmatpush3.bf16.msra.mxu1 %v405_v13  ;;  %v419_v40 = vpack.c.bf16 %v205_v38, %v204_v37  ;;  %v189_v42 = vld [vmem:[%s612_s1 + $0x58] sm:$0xff]  ;;  %v207_v44 = vld [vmem:[%s612_s1 + $0xe8] sm:$0xff]  ;;  %v190_v47 = vld [vmem:[%s612_s1 + $0x60] sm:$0xff] }
   0xe   : > { %s360_s8 = sshll.u32 %s615_s17, 4  ;;  %408 = vmatprep.subr.bf16.mxu0 %v407_v14  ;;  %433 = vmatprep.subr.bf16.mxu1 %v407_v14  ;;  %v421_v45 = vpack.c.bf16 %v189_v42, %v188_v41  ;;  %v423_v46 = vpack.c.bf16 %v207_v44, %v206_v43  ;;  %v191_v48 = vld [vmem:[%s612_s1 + $0x68] sm:$0xff]  ;;  %v208_v49 = vld [vmem:[%s612_s1 + $0xf0] sm:$0xff]  ;;  %v209_v50 = vld [vmem:[%s612_s1 + $0xf8] sm:$0xff]  ;;  %s353_s28 = sshll.u32 %s615_s17, 3 }
   0xf   : > { %s142_s16 = scalar_lea.vmem %s611_s0, %s360_s8  ;;  %v425_v53 = vpack.c.bf16 %v191_v48, %v190_v47  ;;  %v427_v56 = vpack.c.bf16 %v209_v50, %v208_v49  ;;  %v192_v57 = vld [vmem:[%s612_s1 + $0x70] sm:$0xff]  ;;  %v193_v58 = vld [vmem:[%s612_s1 + $0x78] sm:$0xff]  ;;  %s148_s3 = scalar_lea.vmem %s613_s2, %s353_s28 }
  0x10   : > { %v150_v25 = vld [vmem:[%s142_s16] sm:$0xff]  ;;  %v151_v26 = vld [vmem:[%s142_s16 + $0x8] sm:$0xff]  ;;  %v152_v27 = vld [vmem:[%s142_s16 + $0x10] sm:$0xff]  ;;  %v429_v63 = vpack.c.bf16 %v193_v58, %v192_v57 }
  0x11   : > { %v354_v28 = vmul.f32 -1.442695, %v150_v25  ;;  %v153_v29 = vld [vmem:[%s142_s16 + $0x18] sm:$0xff]  ;;  %410 = vmatpush3.bf16.msra.mxu0 %v409_v19  ;;  %441 = vmatpush3.bf16.msra.mxu1 %v409_v19  ;;  %v355_v31 = vmul.f32 -1.442695, %v151_v26 }
  0x12   : > { %v356_v32 = vmul.f32 -1.442695, %v152_v27  ;;  %v357_v33 = vmul.f32 -1.442695, %v153_v29  ;;  %412 = vmatprep.subr.bf16.mxu0 %v411_v20  ;;  %434 = vmatprep.subr.bf16.mxu1 %v411_v20 }
  0x13   : > { %455 = vpow2.f32 %v354_v28 }
  0x14   : > { %457 = vpow2.f32 %v355_v31 }
  0x15   : > { %459 = vpow2.f32 %v356_v32  ;;  %414 = vmatpush3.bf16.msra.mxu0 %v413_v30  ;;  %442 = vmatpush3.bf16.msra.mxu1 %v413_v30 }
  0x16   : > { %461 = vpow2.f32 %v357_v33  ;;  %416 = vmatprep.subr.bf16.mxu0 %v415_v34  ;;  %435 = vmatprep.subr.bf16.mxu1 %v415_v34 }
  0x19   : > { %418 = vmatpush3.bf16.msra.mxu0 %v417_v39  ;;  %443 = vmatpush3.bf16.msra.mxu1 %v417_v39 }
  0x1a   : > { %420 = vmatprep.subr.bf16.mxu0 %v419_v40  ;;  %436 = vmatprep.subr.bf16.mxu1 %v419_v40 }
  0x1d   : > { %v456_v51 = vpop.eup %455  ;;  %422 = vmatpush3.bf16.msra.mxu0 %v421_v45  ;;  %444 = vmatpush3.bf16.msra.mxu1 %v421_v45 }
  0x1e   : > { %v458_v52 = vpop.eup %457  ;;  %v166_v54 = vadd.f32 1.0, %v456_v51  ;;  %424 = vmatprep.subr.bf16.mxu0 %v423_v46  ;;  %437 = vmatprep.subr.bf16.mxu1 %v423_v46 }
  0x1f   : > { %v460_v55 = vpop.eup %459  ;;  %v167_v59 = vadd.f32 1.0, %v458_v52 }
  0x20   : > { %v462_v60 = vpop.eup %461  ;;  %v168_v61 = vadd.f32 1.0, %v460_v55  ;;  %463 = vrcp.f32 %v166_v54 }
  0x21   : > { %465 = vrcp.f32 %v167_v59  ;;  %v169_v62 = vadd.f32 1.0, %v462_v60  ;;  %426 = vmatpush3.bf16.msra.mxu0 %v425_v53  ;;  %445 = vmatpush3.bf16.msra.mxu1 %v425_v53 }
  0x22   : > { %467 = vrcp.f32 %v168_v61  ;;  %428 = vmatprep.subr.bf16.mxu0 %v427_v56  ;;  %438 = vmatprep.subr.bf16.mxu1 %v427_v56 }
  0x23   : > { %469 = vrcp.f32 %v169_v62 }
  0x25   : > { %430 = vmatpush3.bf16.msra.mxu0 %v429_v63  ;;  %446 = vmatpush3.bf16.msra.mxu1 %v429_v63 }
  0x2a   : > { %v464_v0 = vpop.eup %463 }
  0x2b   : > { %v466_v1 = vpop.eup %465 }
  0x2c   : > { %v468_v2 = vpop.eup %467  ;;  %274 = vmatprep.mubr.f32.mxu0 %v466_v1 }
  0x2d   : > { %v470_v3 = vpop.eup %469  ;;  %275 = vmatmul.mubr.f32.vlgmr.msra.gmra.mrb[0].mxu0 %v464_v0 }
  0x2e   : > { %279 = vmatprep.mubr.f32.mxu1 %v470_v3 }
  0x2f   : > { %280 = vmatmul.mubr.f32.vlgmr.msra.gmra.mrb[0].mxu1 %v468_v2 }
 0x100   : > { %v393_v4 = vpop.f32.mrb[0].mxu0 }
 0x101   : > { %v394_v5 = vpop.f32.mrb[1].mxu0 }
 0x102   : > { %v396_v6 = vpop.f32.mrb[0].mxu1  ;;  %v395_v7 = vadd.f32 %v394_v5, %v393_v4 }
 0x103   : > { %v397_v8 = vpop.f32.mrb[1].mxu1 }
 0x104   : > { %286 = vst.msk [vmem:[%s148_s3] sm:$0xff] %vm285_vm0, %v395_v7  ;;  %v398_v9 = vadd.f32 %v397_v8, %v396_v6 }
 0x106   : > { %287 = vst.msk [vmem:[%s148_s3 + $0x8] sm:$0xff] %vm285_vm0, %v398_v9 }
 0x107 PF: > { %s12_s9 = sadd.s32 1, %s477_s9  }
 0x108   : > { %p9_p4 = scmp.ge.s32.totalorder %s12_s9, 4  }
 0x10a   :  { %11 = sbr.rel (!%p9_p4) target bundleno = 1 (0x1), region = 58 }

</bundles_post_ra>
